<compile_context>
chip_gen: v6e
topology: v6e:2x2x1
jax: 0.10.0
libtpu: 0.0.40
codegen_flags: <defaults>
</compile_context>

<pallas_src>
import math

import numpy as np

import jax
import jax.numpy as jnp
from jax import lax
from jax.experimental import pallas as pl
from jax.experimental.pallas import tpu as pltpu  # noqa: F401  (TPU backend assumed)

# Model / problem sizes (consistent with the module's __init__ args).
BATCH = 2
SEQ = 8
EMB = 32
HEADS = 4
HEAD_DIM = EMB // HEADS
FF = 64
LN_EPS = 1e-5        # PyTorch nn.LayerNorm default
NEG_BIG = -1e30      # finite "minus infinity" (uniform; avoids -inf - -inf NaNs)


def _decoder_layer_kernel(
    x_ref,      # (B*S, E)   activations, batch folded into sublanes
    mask_ref,   # (B*S, B*S) combined additive mask (causal + cross-batch + padding), finite
    w_qkv_ref,  # (E, 3E)    fused [q|k|v] projection, q columns pre-scaled by 1/sqrt(hd)
    w_o_ref,    # (E, E)     out_proj.weight^T
    w1_ref,     # (E, F)     feed_forward[0].weight^T
    w2_ref,     # (F, E)     feed_forward[3].weight^T
    vec_ref,    # (6, 96)    packed rows: b_qkv(3E) | b_o(E) | g2(E) | bt2(E) | b1(F) | b2(E)
    o_ref,      # (B*S, E)
):
    BS, E = x_ref.shape
    F = w1_ref.shape[1]
    H = HEADS
    hd = E // H

    x = x_ref[...]                                  # (BS, E)
    mask = mask_ref[...]                            # (BS, BS), finite additive bias

    # Packed parameter rows (static sub-slices of one slab operand).
    b_qkv = vec_ref[0:1, 0:3 * E]                   # (1, 3E)
    b_o   = vec_ref[1:2, 0:E]                       # (1, E)
    g2    = vec_ref[2:3, 0:E]
    bt2   = vec_ref[3:4, 0:E]
    b1    = vec_ref[4:5, 0:F]
    b2    = vec_ref[5:6, 0:E]

    # ---- fused QKV projection: single lane-dense MXU sequence ------------
    qkv = jnp.dot(x, w_qkv_ref[...],
                  preferred_element_type=jnp.float32) + b_qkv        # (BS, 3E)

    # ---- multi-head attention, unrolled over heads ------------------------
    # (per-head matmuls are inherent at hd=8; static slices only, no reshapes)
    acc = None
    for h in range(H):
        lo = h * hd
        q_h = qkv[:, lo:lo + hd]                    # (BS, hd), already 1/sqrt(hd)-scaled
        k_h = qkv[:, E + lo:E + lo + hd]            # (BS, hd)
        v_h = qkv[:, 2 * E + lo:2 * E + lo + hd]    # (BS, hd)

        s = jnp.einsum("qd,kd->qk", q_h, k_h,
                       preferred_element_type=jnp.float32) + mask    # (BS, BS)
        m = jnp.max(s, axis=-1, keepdims=True)
        e = jnp.exp(s - m)
        denom = jnp.sum(e, axis=-1, keepdims=True)
        p = e * pl.reciprocal(denom, approx=True)   # softmax (attn dropout = identity)

        ctx = jnp.dot(p, v_h, preferred_element_type=jnp.float32)    # (BS, hd)
        # out-projection contribution of this head: 8-aligned sublane slice of W_o.
        contrib = jnp.dot(ctx, w_o_ref[lo:lo + hd, :],
                          preferred_element_type=jnp.float32)        # (BS, E)
        acc = contrib if acc is None else acc + contrib
    attn = acc + b_o                                                  # (BS, E)

    # ---- residual + LayerNorm2 --------------------------------------------
    h1 = x + attn
    mu = jnp.mean(h1, axis=-1, keepdims=True)
    d = h1 - mu
    var = jnp.mean(d * d, axis=-1, keepdims=True)
    n2 = d * lax.rsqrt(var + LN_EPS) * g2 + bt2

    # ---- feed-forward: Linear -> GELU(exact) -> Linear (+ residual) -------
    f = jnp.dot(n2, w1_ref[...], preferred_element_type=jnp.float32) + b1
    f = 0.5 * f * (1.0 + lax.erf(f * (1.0 / math.sqrt(2.0))))   # nn.GELU() exact form
    f = jnp.dot(f, w2_ref[...], preferred_element_type=jnp.float32) + b2

    o_ref[...] = n2 + f


def prepare_decoder_params(w_in, b_in, w_out, b_out, g2, bt2, w1, b1, w2, b2,
                           num_heads=HEADS):
    """One-time re-layout of PyTorch-format parameters into the kernel layout.

    Called once at parameter-load time (NOT per forward call).  The
    1/sqrt(head_dim) query scale is folded into the q weights/bias, and the
    six small bias/scale vectors are packed into a single (6, 96) slab so the
    per-call pallas_call has only 7 operands.
    """
    three_e, e = w_in.shape
    assert three_e == 3 * e
    hd = e // num_heads
    scale = 1.0 / math.sqrt(hd)
    f = w1.shape[0]

    w_in_t = w_in.T                                               # (E, 3E): [q | k | v]
    w_qkv = jnp.concatenate([w_in_t[:, :e] * scale, w_in_t[:, e:]], axis=1)   # (E, 3E)
    b_qkv = jnp.concatenate([b_in[:e] * scale, b_in[e:]])                      # (3E,)

    w_o = w_out.T                                                 # (E, E)

    width = max(3 * e, f)                                         # 96 here
    def row(v):
        return jnp.pad(v, (0, width - v.shape[0])).reshape(1, width)
    vec_slab = jnp.concatenate(
        [row(b_qkv), row(b_out), row(g2), row(bt2), row(b1), row(b2)],
        axis=0).astype(jnp.float32)                               # (6, 96)

    return (w_qkv, w_o, w1.T, w2.T, vec_slab)


@jax.jit
def decoder_layer(x, attn_mask, pad_add, params):
    """x: (B,S,E); attn_mask: (S,S) additive; pad_add: (B,S) additive (0/-inf);
    params: output of prepare_decoder_params()."""
    B, S, E = x.shape
    w_qkv, w_o, w1t, w2t, vec_slab = params

    # Contiguous (bitcast) reshape only — no per-call transposes.
    x2d = x.reshape(B * S, E)

    # Combined additive mask, assembled OUTSIDE the kernel (no in-kernel
    # concats/retiles):  tiled attn_mask + static cross-batch block bias +
    # broadcast key-padding bias, clamped to a uniform finite NEG_BIG.
    bid = np.repeat(np.arange(B), S)
    block_bias = np.where(bid[:, None] == bid[None, :], 0.0, NEG_BIG).astype(np.float32)
    mask = jnp.tile(attn_mask, (B, B)) + block_bias + pad_add.reshape(1, B * S)
    mask = jnp.maximum(mask, NEG_BIG)                              # finite everywhere

    out2d = pl.pallas_call(
        _decoder_layer_kernel,
        out_shape=jax.ShapeDtypeStruct((B * S, E), jnp.float32),
        # Gridless call: every operand is a single whole-array VMEM block
        # (total resident footprint ~50 KiB), so no BlockSpecs / grid needed.
        # TODO(synk): for large B or S, switch to a batch-parallel grid
        # (v7x dual-TC) and a flash-style KV-tiled accumulator.
    )(x2d, mask, w_qkv, w_o, w1t, w2t, vec_slab)
    return out2d.reshape(B, S, E)


def decoder_layer_ref(x, attn_mask, pad_add,
                      w_in, b_in, w_out, b_out, g2, bt2, w1, b1, w2, b2):
    """Pure-JAX reference (same math as the PyTorch forward, eval mode)."""
    B, S, E = x.shape
    qkv = jnp.einsum("bse,fe->bsf", x, w_in) + b_in
    q, k, v = jnp.split(qkv, 3, axis=-1)
    sh = lambda t: t.reshape(B, S, HEADS, HEAD_DIM).transpose(0, 2, 1, 3)
    q, k, v = sh(q) * (1.0 / math.sqrt(HEAD_DIM)), sh(k), sh(v)
    scores = jnp.einsum("bhqd,bhkd->bhqk", q, k)
    scores = scores + attn_mask[None, None] + pad_add[:, None, None, :]
    p = jax.nn.softmax(scores, axis=-1)
    attn = jnp.einsum("bhqk,bhkd->bhqd", p, v).transpose(0, 2, 1, 3).reshape(B, S, E)
    attn = jnp.einsum("bse,fe->bsf", attn, w_out) + b_out
    h1 = x + attn
    mu = h1.mean(-1, keepdims=True)
    var = ((h1 - mu) ** 2).mean(-1, keepdims=True)
    n2 = (h1 - mu) / jnp.sqrt(var + LN_EPS) * g2 + bt2
    f = jax.nn.gelu(n2 @ w1.T + b1, approximate=False)
    f = f @ w2.T + b2
    return n2 + f


if __name__ == "__main__":
    key = jax.random.PRNGKey(0)
    ks = jax.random.split(key, 10)

    def init(k, shape, scale=0.05):
        return (scale * jax.random.normal(k, shape)).astype(jnp.float32)

    x = jax.random.normal(ks[0], (BATCH, SEQ, EMB), jnp.float32)

    # Causal additive attention mask (float, 0 allowed / -inf blocked).
    attn_mask = jnp.where(
        jnp.triu(jnp.ones((SEQ, SEQ), dtype=bool), k=1), -jnp.inf, 0.0
    ).astype(jnp.float32)
    # key_padding_mask: last 2 tokens of batch element 1 are padding.
    padding_mask = jnp.zeros((BATCH, SEQ), dtype=bool).at[1, SEQ - 2:].set(True)
    pad_add = jnp.where(padding_mask, -jnp.inf, 0.0).astype(jnp.float32)

    # Parameters (PyTorch layouts): in_proj (3E,E), out_proj (E,E), ffn (F,E)/(E,F).
    w_in = init(ks[1], (3 * EMB, EMB))
    b_in = init(ks[2], (3 * EMB,))
    w_out = init(ks[3], (EMB, EMB))
    b_out = init(ks[4], (EMB,))
    g2 = jnp.ones((EMB,), jnp.float32)
    bt2 = jnp.zeros((EMB,), jnp.float32)
    w1 = init(ks[5], (FF, EMB))
    b1 = init(ks[6], (FF,))
    w2 = init(ks[7], (EMB, FF))
    b2 = init(ks[8], (EMB,))

    # One-time parameter re-layout (kept out of the per-call hot path).
    params = prepare_decoder_params(w_in, b_in, w_out, b_out, g2, bt2, w1, b1, w2, b2)

    out = decoder_layer(x, attn_mask, pad_add, params)
    out = jax.block_until_ready(out)

    ref = decoder_layer_ref(x, attn_mask, pad_add,
                            w_in, b_in, w_out, b_out, g2, bt2, w1, b1, w2, b2)
    assert out.shape == (BATCH, SEQ, EMB)
    assert bool(jnp.all(jnp.isfinite(out)))
    # Tolerance relaxed vs exact f32 because softmax uses the EUP approximate reciprocal.
    assert jnp.allclose(out, ref, atol=2e-3, rtol=2e-3), "mismatch vs pure-JAX reference"

    print("KERNEL_OK")
</pallas_src>

<mosaic_0001>
module attributes {stable_mosaic.version = 11 : i64} {
  func.func @_decoder_layer_kernel(%arg0: memref<16x32xf32, #tpu.memory_space<vmem>>, %arg1: memref<16x16xf32, #tpu.memory_space<vmem>>, %arg2: memref<32x96xf32, #tpu.memory_space<vmem>>, %arg3: memref<32x32xf32, #tpu.memory_space<vmem>>, %arg4: memref<32x64xf32, #tpu.memory_space<vmem>>, %arg5: memref<64x32xf32, #tpu.memory_space<vmem>>, %arg6: memref<6x96xf32, #tpu.memory_space<vmem>>, %arg7: memref<16x32xf32, #tpu.memory_space<vmem>>) attributes {dimension_semantics = [], scalar_prefetch = 0 : i64, scratch_operands = 0 : i64, tpu.core_type = #tpu.core_type<tc>} {
    %c0 = arith.constant 0 : index
    %c0_0 = arith.constant 0 : index
    %0 = vector.load %arg0[%c0, %c0_0] : memref<16x32xf32, #tpu.memory_space<vmem>>, vector<16x32xf32>
    %c0_1 = arith.constant 0 : index
    %c0_2 = arith.constant 0 : index
    %1 = vector.load %arg1[%c0_1, %c0_2] : memref<16x16xf32, #tpu.memory_space<vmem>>, vector<16x16xf32>
    %c0_3 = arith.constant 0 : index
    %c0_4 = arith.constant 0 : index
    %2 = vector.load %arg6[%c0_3, %c0_4] : memref<6x96xf32, #tpu.memory_space<vmem>>, vector<1x96xf32>
    %c1 = arith.constant 1 : index
    %c0_5 = arith.constant 0 : index
    %3 = vector.load %arg6[%c1, %c0_5] : memref<6x96xf32, #tpu.memory_space<vmem>>, vector<1x32xf32>
    %c2 = arith.constant 2 : index
    %c0_6 = arith.constant 0 : index
    %4 = vector.load %arg6[%c2, %c0_6] : memref<6x96xf32, #tpu.memory_space<vmem>>, vector<1x32xf32>
    %c3 = arith.constant 3 : index
    %c0_7 = arith.constant 0 : index
    %5 = vector.load %arg6[%c3, %c0_7] : memref<6x96xf32, #tpu.memory_space<vmem>>, vector<1x32xf32>
    %c4 = arith.constant 4 : index
    %c0_8 = arith.constant 0 : index
    %6 = vector.load %arg6[%c4, %c0_8] : memref<6x96xf32, #tpu.memory_space<vmem>>, vector<1x64xf32>
    %c5 = arith.constant 5 : index
    %c0_9 = arith.constant 0 : index
    %7 = vector.load %arg6[%c5, %c0_9] : memref<6x96xf32, #tpu.memory_space<vmem>>, vector<1x32xf32>
    %c0_10 = arith.constant 0 : index
    %c0_11 = arith.constant 0 : index
    %8 = vector.load %arg2[%c0_10, %c0_11] : memref<32x96xf32, #tpu.memory_space<vmem>>, vector<32x96xf32>
    %cst = arith.constant dense<0.000000e+00> : vector<16x96xf32>
    %9 = tpu.matmul %0, %8, %cst {dimension_numbers = #tpu.dot_dimension_numbers<[1], [0], [0], [1], [0, 0, 1, 1], [], []>} : vector<16x32xf32>, vector<32x96xf32>, vector<16x96xf32> -> vector<16x96xf32>
    %10 = vector.broadcast %2 : vector<1x96xf32> to vector<16x96xf32>
    %11 = arith.addf %9, %10 : vector<16x96xf32>
    %12 = vector.extract_strided_slice %11 {offsets = [0, 0], sizes = [16, 8], strides = [1, 1]} : vector<16x96xf32> to vector<16x8xf32>
    %13 = vector.extract_strided_slice %11 {offsets = [0, 32], sizes = [16, 8], strides = [1, 1]} : vector<16x96xf32> to vector<16x8xf32>
    %14 = vector.extract_strided_slice %11 {offsets = [0, 64], sizes = [16, 8], strides = [1, 1]} : vector<16x96xf32> to vector<16x8xf32>
    "tpu.trace_start"() <{level = 10 : i32, message = "qd,kd->qk"}> : () -> ()
    %cst_12 = arith.constant dense<0.000000e+00> : vector<16x16xf32>
    %15 = tpu.matmul %12, %13, %cst_12 {dimension_numbers = #tpu.dot_dimension_numbers<[1], [1], [0], [0], [0, 0, 1, 0], [], []>} : vector<16x8xf32>, vector<16x8xf32>, vector<16x16xf32> -> vector<16x16xf32>
    "tpu.trace_stop"() : () -> ()
    %16 = arith.addf %15, %1 : vector<16x16xf32>
    %cst_13 = arith.constant dense<0xFF800000> : vector<16xf32>
    %17 = vector.multi_reduction <maximumf>, %16, %cst_13 [1] : vector<16x16xf32> to vector<16xf32>
    %18 = vector.shape_cast %17 : vector<16xf32> to vector<16x1xf32>
    %19 = vector.broadcast %18 : vector<16x1xf32> to vector<16x16xf32>
    %20 = arith.subf %16, %19 : vector<16x16xf32>
    %21 = math.exp %20 : vector<16x16xf32>
    %cst_14 = arith.constant dense<0.000000e+00> : vector<16xf32>
    %22 = vector.multi_reduction <add>, %21, %cst_14 [1] : vector<16x16xf32> to vector<16xf32>
    %23 = vector.shape_cast %22 : vector<16xf32> to vector<16x1xf32>
    %24 = tpu.reciprocal %23 {approx = true} : vector<16x1xf32> -> vector<16x1xf32>
    %25 = vector.broadcast %24 : vector<16x1xf32> to vector<16x16xf32>
    %26 = arith.mulf %21, %25 : vector<16x16xf32>
    %cst_15 = arith.constant dense<0.000000e+00> : vector<16x8xf32>
    %27 = tpu.matmul %26, %14, %cst_15 {dimension_numbers = #tpu.dot_dimension_numbers<[1], [0], [0], [1], [0, 0, 1, 1], [], []>} : vector<16x16xf32>, vector<16x8xf32>, vector<16x8xf32> -> vector<16x8xf32>
    %c0_16 = arith.constant 0 : index
    %c0_17 = arith.constant 0 : index
    %28 = vector.load %arg3[%c0_16, %c0_17] : memref<32x32xf32, #tpu.memory_space<vmem>>, vector<8x32xf32>
    %cst_18 = arith.constant dense<0.000000e+00> : vector<16x32xf32>
    %29 = tpu.matmul %27, %28, %cst_18 {dimension_numbers = #tpu.dot_dimension_numbers<[1], [0], [0], [1], [0, 0, 1, 1], [], []>} : vector<16x8xf32>, vector<8x32xf32>, vector<16x32xf32> -> vector<16x32xf32>
    %30 = vector.extract_strided_slice %11 {offsets = [0, 8], sizes = [16, 8], strides = [1, 1]} : vector<16x96xf32> to vector<16x8xf32>
    %31 = vector.extract_strided_slice %11 {offsets = [0, 40], sizes = [16, 8], strides = [1, 1]} : vector<16x96xf32> to vector<16x8xf32>
    %32 = vector.extract_strided_slice %11 {offsets = [0, 72], sizes = [16, 8], strides = [1, 1]} : vector<16x96xf32> to vector<16x8xf32>
    "tpu.trace_start"() <{level = 10 : i32, message = "qd,kd->qk"}> : () -> ()
    %cst_19 = arith.constant dense<0.000000e+00> : vector<16x16xf32>
    %33 = tpu.matmul %30, %31, %cst_19 {dimension_numbers = #tpu.dot_dimension_numbers<[1], [1], [0], [0], [0, 0, 1, 0], [], []>} : vector<16x8xf32>, vector<16x8xf32>, vector<16x16xf32> -> vector<16x16xf32>
    "tpu.trace_stop"() : () -> ()
    %34 = arith.addf %33, %1 : vector<16x16xf32>
    %cst_20 = arith.constant dense<0xFF800000> : vector<16xf32>
    %35 = vector.multi_reduction <maximumf>, %34, %cst_20 [1] : vector<16x16xf32> to vector<16xf32>
    %36 = vector.shape_cast %35 : vector<16xf32> to vector<16x1xf32>
    %37 = vector.broadcast %36 : vector<16x1xf32> to vector<16x16xf32>
    %38 = arith.subf %34, %37 : vector<16x16xf32>
    %39 = math.exp %38 : vector<16x16xf32>
    %cst_21 = arith.constant dense<0.000000e+00> : vector<16xf32>
    %40 = vector.multi_reduction <add>, %39, %cst_21 [1] : vector<16x16xf32> to vector<16xf32>
    %41 = vector.shape_cast %40 : vector<16xf32> to vector<16x1xf32>
    %42 = tpu.reciprocal %41 {approx = true} : vector<16x1xf32> -> vector<16x1xf32>
    %43 = vector.broadcast %42 : vector<16x1xf32> to vector<16x16xf32>
    %44 = arith.mulf %39, %43 : vector<16x16xf32>
    %cst_22 = arith.constant dense<0.000000e+00> : vector<16x8xf32>
    %45 = tpu.matmul %44, %32, %cst_22 {dimension_numbers = #tpu.dot_dimension_numbers<[1], [0], [0], [1], [0, 0, 1, 1], [], []>} : vector<16x16xf32>, vector<16x8xf32>, vector<16x8xf32> -> vector<16x8xf32>
    %c8 = arith.constant 8 : index
    %c0_23 = arith.constant 0 : index
    %46 = vector.load %arg3[%c8, %c0_23] : memref<32x32xf32, #tpu.memory_space<vmem>>, vector<8x32xf32>
    %cst_24 = arith.constant dense<0.000000e+00> : vector<16x32xf32>
    %47 = tpu.matmul %45, %46, %cst_24 {dimension_numbers = #tpu.dot_dimension_numbers<[1], [0], [0], [1], [0, 0, 1, 1], [], []>} : vector<16x8xf32>, vector<8x32xf32>, vector<16x32xf32> -> vector<16x32xf32>
    %48 = arith.addf %29, %47 : vector<16x32xf32>
    %49 = vector.extract_strided_slice %11 {offsets = [0, 16], sizes = [16, 8], strides = [1, 1]} : vector<16x96xf32> to vector<16x8xf32>
    %50 = vector.extract_strided_slice %11 {offsets = [0, 48], sizes = [16, 8], strides = [1, 1]} : vector<16x96xf32> to vector<16x8xf32>
    %51 = vector.extract_strided_slice %11 {offsets = [0, 80], sizes = [16, 8], strides = [1, 1]} : vector<16x96xf32> to vector<16x8xf32>
    "tpu.trace_start"() <{level = 10 : i32, message = "qd,kd->qk"}> : () -> ()
    %cst_25 = arith.constant dense<0.000000e+00> : vector<16x16xf32>
    %52 = tpu.matmul %49, %50, %cst_25 {dimension_numbers = #tpu.dot_dimension_numbers<[1], [1], [0], [0], [0, 0, 1, 0], [], []>} : vector<16x8xf32>, vector<16x8xf32>, vector<16x16xf32> -> vector<16x16xf32>
    "tpu.trace_stop"() : () -> ()
    %53 = arith.addf %52, %1 : vector<16x16xf32>
    %cst_26 = arith.constant dense<0xFF800000> : vector<16xf32>
    %54 = vector.multi_reduction <maximumf>, %53, %cst_26 [1] : vector<16x16xf32> to vector<16xf32>
    %55 = vector.shape_cast %54 : vector<16xf32> to vector<16x1xf32>
    %56 = vector.broadcast %55 : vector<16x1xf32> to vector<16x16xf32>
    %57 = arith.subf %53, %56 : vector<16x16xf32>
    %58 = math.exp %57 : vector<16x16xf32>
    %cst_27 = arith.constant dense<0.000000e+00> : vector<16xf32>
    %59 = vector.multi_reduction <add>, %58, %cst_27 [1] : vector<16x16xf32> to vector<16xf32>
    %60 = vector.shape_cast %59 : vector<16xf32> to vector<16x1xf32>
    %61 = tpu.reciprocal %60 {approx = true} : vector<16x1xf32> -> vector<16x1xf32>
    %62 = vector.broadcast %61 : vector<16x1xf32> to vector<16x16xf32>
    %63 = arith.mulf %58, %62 : vector<16x16xf32>
    %cst_28 = arith.constant dense<0.000000e+00> : vector<16x8xf32>
    %64 = tpu.matmul %63, %51, %cst_28 {dimension_numbers = #tpu.dot_dimension_numbers<[1], [0], [0], [1], [0, 0, 1, 1], [], []>} : vector<16x16xf32>, vector<16x8xf32>, vector<16x8xf32> -> vector<16x8xf32>
    %c16 = arith.constant 16 : index
    %c0_29 = arith.constant 0 : index
    %65 = vector.load %arg3[%c16, %c0_29] : memref<32x32xf32, #tpu.memory_space<vmem>>, vector<8x32xf32>
    %cst_30 = arith.constant dense<0.000000e+00> : vector<16x32xf32>
    %66 = tpu.matmul %64, %65, %cst_30 {dimension_numbers = #tpu.dot_dimension_numbers<[1], [0], [0], [1], [0, 0, 1, 1], [], []>} : vector<16x8xf32>, vector<8x32xf32>, vector<16x32xf32> -> vector<16x32xf32>
    %67 = arith.addf %48, %66 : vector<16x32xf32>
    %68 = vector.extract_strided_slice %11 {offsets = [0, 24], sizes = [16, 8], strides = [1, 1]} : vector<16x96xf32> to vector<16x8xf32>
    %69 = vector.extract_strided_slice %11 {offsets = [0, 56], sizes = [16, 8], strides = [1, 1]} : vector<16x96xf32> to vector<16x8xf32>
    %70 = vector.extract_strided_slice %11 {offsets = [0, 88], sizes = [16, 8], strides = [1, 1]} : vector<16x96xf32> to vector<16x8xf32>
    "tpu.trace_start"() <{level = 10 : i32, message = "qd,kd->qk"}> : () -> ()
    %cst_31 = arith.constant dense<0.000000e+00> : vector<16x16xf32>
    %71 = tpu.matmul %68, %69, %cst_31 {dimension_numbers = #tpu.dot_dimension_numbers<[1], [1], [0], [0], [0, 0, 1, 0], [], []>} : vector<16x8xf32>, vector<16x8xf32>, vector<16x16xf32> -> vector<16x16xf32>
    "tpu.trace_stop"() : () -> ()
    %72 = arith.addf %71, %1 : vector<16x16xf32>
    %cst_32 = arith.constant dense<0xFF800000> : vector<16xf32>
    %73 = vector.multi_reduction <maximumf>, %72, %cst_32 [1] : vector<16x16xf32> to vector<16xf32>
    %74 = vector.shape_cast %73 : vector<16xf32> to vector<16x1xf32>
    %75 = vector.broadcast %74 : vector<16x1xf32> to vector<16x16xf32>
    %76 = arith.subf %72, %75 : vector<16x16xf32>
    %77 = math.exp %76 : vector<16x16xf32>
    %cst_33 = arith.constant dense<0.000000e+00> : vector<16xf32>
    %78 = vector.multi_reduction <add>, %77, %cst_33 [1] : vector<16x16xf32> to vector<16xf32>
    %79 = vector.shape_cast %78 : vector<16xf32> to vector<16x1xf32>
    %80 = tpu.reciprocal %79 {approx = true} : vector<16x1xf32> -> vector<16x1xf32>
    %81 = vector.broadcast %80 : vector<16x1xf32> to vector<16x16xf32>
    %82 = arith.mulf %77, %81 : vector<16x16xf32>
    %cst_34 = arith.constant dense<0.000000e+00> : vector<16x8xf32>
    %83 = tpu.matmul %82, %70, %cst_34 {dimension_numbers = #tpu.dot_dimension_numbers<[1], [0], [0], [1], [0, 0, 1, 1], [], []>} : vector<16x16xf32>, vector<16x8xf32>, vector<16x8xf32> -> vector<16x8xf32>
    %c24 = arith.constant 24 : index
    %c0_35 = arith.constant 0 : index
    %84 = vector.load %arg3[%c24, %c0_35] : memref<32x32xf32, #tpu.memory_space<vmem>>, vector<8x32xf32>
    %cst_36 = arith.constant dense<0.000000e+00> : vector<16x32xf32>
    %85 = tpu.matmul %83, %84, %cst_36 {dimension_numbers = #tpu.dot_dimension_numbers<[1], [0], [0], [1], [0, 0, 1, 1], [], []>} : vector<16x8xf32>, vector<8x32xf32>, vector<16x32xf32> -> vector<16x32xf32>
    %86 = arith.addf %67, %85 : vector<16x32xf32>
    %87 = vector.broadcast %3 : vector<1x32xf32> to vector<16x32xf32>
    %88 = arith.addf %86, %87 : vector<16x32xf32>
    %89 = arith.addf %0, %88 : vector<16x32xf32>
    %cst_37 = arith.constant dense<0.000000e+00> : vector<16xf32>
    %90 = vector.multi_reduction <add>, %89, %cst_37 [1] : vector<16x32xf32> to vector<16xf32>
    %91 = vector.shape_cast %90 : vector<16xf32> to vector<16x1xf32>
    %cst_38 = arith.constant 3.200000e+01 : f32
    %92 = vector.broadcast %cst_38 : f32 to vector<16x1xf32>
    %93 = arith.divf %91, %92 : vector<16x1xf32>
    %94 = vector.broadcast %93 : vector<16x1xf32> to vector<16x32xf32>
    %95 = arith.subf %89, %94 : vector<16x32xf32>
    %96 = arith.mulf %95, %95 : vector<16x32xf32>
    %cst_39 = arith.constant dense<0.000000e+00> : vector<16xf32>
    %97 = vector.multi_reduction <add>, %96, %cst_39 [1] : vector<16x32xf32> to vector<16xf32>
    %98 = vector.shape_cast %97 : vector<16xf32> to vector<16x1xf32>
    %cst_40 = arith.constant 3.200000e+01 : f32
    %99 = vector.broadcast %cst_40 : f32 to vector<16x1xf32>
    %100 = arith.divf %98, %99 : vector<16x1xf32>
    %cst_41 = arith.constant 9.99999974E-6 : f32
    %101 = vector.broadcast %cst_41 : f32 to vector<16x1xf32>
    %102 = arith.addf %100, %101 : vector<16x1xf32>
    %103 = math.rsqrt %102 : vector<16x1xf32>
    %104 = vector.broadcast %103 : vector<16x1xf32> to vector<16x32xf32>
    %105 = arith.mulf %95, %104 : vector<16x32xf32>
    %106 = vector.broadcast %4 : vector<1x32xf32> to vector<16x32xf32>
    %107 = arith.mulf %105, %106 : vector<16x32xf32>
    %108 = vector.broadcast %5 : vector<1x32xf32> to vector<16x32xf32>
    %109 = arith.addf %107, %108 : vector<16x32xf32>
    %c0_42 = arith.constant 0 : index
    %c0_43 = arith.constant 0 : index
    %110 = vector.load %arg4[%c0_42, %c0_43] : memref<32x64xf32, #tpu.memory_space<vmem>>, vector<32x64xf32>
    %cst_44 = arith.constant dense<0.000000e+00> : vector<16x64xf32>
    %111 = tpu.matmul %109, %110, %cst_44 {dimension_numbers = #tpu.dot_dimension_numbers<[1], [0], [0], [1], [0, 0, 1, 1], [], []>} : vector<16x32xf32>, vector<32x64xf32>, vector<16x64xf32> -> vector<16x64xf32>
    %112 = vector.broadcast %6 : vector<1x64xf32> to vector<16x64xf32>
    %113 = arith.addf %111, %112 : vector<16x64xf32>
    %cst_45 = arith.constant 5.000000e-01 : f32
    %114 = vector.broadcast %cst_45 : f32 to vector<16x64xf32>
    %115 = arith.mulf %114, %113 : vector<16x64xf32>
    %cst_46 = arith.constant 0.707106769 : f32
    %116 = vector.broadcast %cst_46 : f32 to vector<16x64xf32>
    %117 = arith.mulf %113, %116 : vector<16x64xf32>
    %118 = math.erf %117 : vector<16x64xf32>
    %cst_47 = arith.constant 1.000000e+00 : f32
    %119 = vector.broadcast %cst_47 : f32 to vector<16x64xf32>
    %120 = arith.addf %119, %118 : vector<16x64xf32>
    %121 = arith.mulf %115, %120 : vector<16x64xf32>
    %c0_48 = arith.constant 0 : index
    %c0_49 = arith.constant 0 : index
    %122 = vector.load %arg5[%c0_48, %c0_49] : memref<64x32xf32, #tpu.memory_space<vmem>>, vector<64x32xf32>
    %cst_50 = arith.constant dense<0.000000e+00> : vector<16x32xf32>
    %123 = tpu.matmul %121, %122, %cst_50 {dimension_numbers = #tpu.dot_dimension_numbers<[1], [0], [0], [1], [0, 0, 1, 1], [], []>} : vector<16x64xf32>, vector<64x32xf32>, vector<16x32xf32> -> vector<16x32xf32>
    %124 = vector.broadcast %7 : vector<1x32xf32> to vector<16x32xf32>
    %125 = arith.addf %123, %124 : vector<16x32xf32>
    %126 = arith.addf %109, %125 : vector<16x32xf32>
    %c0_51 = arith.constant 0 : index
    %c0_52 = arith.constant 0 : index
    %127 = vector.load %arg7[%c0_51, %c0_52] : memref<16x32xf32, #tpu.memory_space<vmem>>, vector<16x32xf32>
    tpu.vector_store %arg7[%c0_51, %c0_52], %126 {strides = array<i32>} : memref<16x32xf32, #tpu.memory_space<vmem>>, vector<16x32xf32>,
    return
  }
}

</mosaic_0001>

<bundles_post_ra>
// kernel: decoder_layer.1
= control target key start
LH: loop header
LB: loop body
LE: loop exit
PB: predicated region body
PF: predicated region fallthrough
CT: control target
= control target key end

     0   :  { %vm45_vm0 = vcmask 261120   ;;  %s2091_s0 = inlined_call_operand.vmem [shape: f32[16,32], index: 0, kind: input, shape index: {}]   ;;  %s2092_s1 = inlined_call_operand.vmem [shape: f32[16,16], index: 1, kind: input, shape index: {}]   ;;  %s2093_s2 = inlined_call_operand.vmem [shape: f32[32,96], index: 2, kind: input, shape index: {}]   ;;  %s2094_s3 = inlined_call_operand.vmem [shape: f32[32,32], index: 3, kind: input, shape index: {}]   ;;  %s2095_s4 = inlined_call_operand.vmem [shape: f32[32,64], index: 4, kind: input, shape index: {}]   ;;  %s2096_s5 = inlined_call_operand.vmem [shape: f32[64,32], index: 5, kind: input, shape index: {}]   ;;  %s2097_s6 = inlined_call_operand.vmem [shape: f32[6,96], index: 6, kind: input, shape index: {}]   ;;  %s2098_s7 = inlined_call_operand.hbm [shape: f32[16,32], index: 7, kind: output, shape index: {}]  }
   0x1   :  { %v40_v0 = vld [vmem:[%s2093_s2 + $0x18] sm:$0xff]  ;;  %v39_v1 = vld [vmem:[%s2093_s2 + $0x10] sm:$0xff]  ;;  %v1885_v2 = vld [vmem:[%s2091_s0] sm:$0xff] }
   0x2   :  { %1629 = vmatprep.subr.mxu0 %v40_v0  ;;  %v38_v3 = vld [vmem:[%s2093_s2 + $0x8] sm:$0xff]  ;;  %1637 = vmatprep.mubr.msk.f32.mxu0 %vm45_vm0, %v1885_v2 }
   0x3   :  { %1630 = vmatpush3.msra.mxu0 %v40_v0 }
   0x4   :  { %12 = vsyncpa [#allocation3], 0  ;;  %1631 = vmatprep.subr.mxu0 %v39_v1  ;;  %v37_v4 = vld [vmem:[%s2093_s2] sm:$0xff]  ;;  %v1898_v5 = vld [vmem:[%s2091_s0 + $0x8] sm:$0xff]  ;;  %vm133_vm1 = vcmask 64512   ;;  %s1822_s2 = smov 88  }
   0x5   :  { %1632 = vmatpush3.msra.mxu0 %v39_v1  ;;  %v1519_v6 = vld [vmem:[%s2097_s6] ss:$0 sm:$0xff]  ;;  %s1823_s0 = smov 96   ;;  %s1824_s15 = smov 120   ;;  %v1932_v17 = vld [vmem:[%s2092_s1 + $0x8] sm:$0xff]  ;;  %vm217_vm2 = vcmask 130048  }
   0x6   :  { %1633 = vmatprep.subr.mxu0 %v38_v3  ;;  %v1937_v19 = vld [vmem:[%s2092_s1] sm:$0xff]  ;;  %s1825_s1 = smov 64   ;;  %s1826_s20 = smov 56   ;;  %vm1417_vm3 = vcmask 523264  }
   0x7   :  { %1634 = vmatpush3.msra.mxu0 %v38_v3  ;;  %s1827_s21 = smov 80   ;;  %s1828_s22 = smov 112  }
   0x8   :  { %1635 = vmatprep.subr.mxu0 %v37_v4  ;;  %s1829_s23 = smov 72   ;;  %s1830_s24 = smov 104  }
   0x9   :  { %1636 = vmatpush3.msra.mxu0 %v37_v4  ;;  %v528_v4 = vld [vmem:[%s2094_s3 + $0x8] sm:$0xff]  ;;  %s1831_s29 = smov 48   ;;  %s1832_s30 = smov 40  }
   0xa   :  { %1638 = vmatmul.mubr.msk.f32.vlgmr.msra.gmra.mxu0 %vm45_vm0, %v1898_v5 }
  0xca   :  { %v1639_v7 = vpop.f32.mrf.mxu0 }
  0xcb   :  { %v1905_v8 = vadd.f32 %v1639_v7, %v1519_v6 }
  0xcc   :  { %v118_v9 = vpop.f32.mrf.mxu0 }
  0xcd   :  { %v1907_v10 = vadd.f32 %v1519_v6, %v118_v9  ;;  %334 = vrot.lane.b32.xlu1 %v1905_v8, %s1822_s2  ;;  %131 = vrot.lane.b32.xlu0 %v1905_v8, %s1823_s0  ;;  %v327_v6 = vld [vmem:[%s2094_s3] sm:$0xff] }
  0xcf   :  { %1644 = vmatprep.mubr.msk.f32.mxu1 %vm133_vm1, %v1907_v10 }
  0xd1   :  { %332 = vrot.lane.b32.xlu1 %v1907_v10, %s1822_s2  ;;  %129 = vrot.lane.b32.xlu0 %v1907_v10, %s1823_s0  ;;  %s1833_s0 = smov [#allocation2]  }
  0xd5   :  { %330 = vrot.lane.b32.xlu1 %v1905_v8, %s1824_s15  ;;  %328 = vrot.lane.b32.xlu0 %v1907_v10, %s1824_s15  ;;  %s1508_s15 = sshll.u32 %s1833_s0, 4  ;;  %s1509_s15 = int_to_ptr.vmem [resolvable:$true] %s1508_s15 }
  0xd6   :  { %s1800_s16 = scalar_lea.vmem %s1509_s15, 256  ;;  %p1805_p1 = scmp.lt.s32.totalorder %s1509_s15, %s1509_s15 }
  0xd7   :  { %p1801_p0 = scmp.ne.s32.totalorder %s1509_s15, %s1800_s16  ;;  %p1806_p2 = scmp.lt.s32.totalorder %s1800_s16, %s1800_s16 }
  0xd9   :  { %p1807_p3 = por %p1806_p2, %p1805_p1 }
  0xdb   :  { %p1808_p4 = pnand %p1807_p3, %p1801_p0 }
 0x13f   :  { %v132_v11 = vpop.permute.xlu0 %131  ;;  %v335_v12 = vpop.permute.xlu1 %334 }
 0x140   :  { %1640 = vmatprep.subr.msk.mxu1 %vm133_vm1, %v132_v11 }
 0x141   :  { %1641 = vmatpush3.xpose.msk.msra.mxu1 %vm133_vm1, %v132_v11 }
 0x143   :  { %v130_v13 = vpop.permute.xlu0 %129  ;;  %v333_v15 = vpop.permute.xlu1 %332 }
 0x144   :  { %1642 = vmatprep.subr.msk.mxu1 %vm133_vm1, %v130_v13 }
 0x145   :  { %1643 = vmatpush3.xpose.msk.msra.mxu1 %vm133_vm1, %v130_v13 }
 0x146   :  { %1654 = vmatprep.subr.msk.mxu1 %vm133_vm1, %v335_v12 }
 0x147   :  { %v329_v14 = vpop.permute.xlu0 %328  ;;  %v331_v16 = vpop.permute.xlu1 %330 }
 0x148   :  { %1645 = vmatmul.mubr.msk.f32.vlgmr.msra.gmra.mxu1 %vm133_vm1, %v1905_v8 }
 0x149   :  { %1655 = vmatpush3.xpose.msk.msra.mxu1 %vm133_vm1, %v335_v12  ;;  %1658 = vmatprep.mubr.msk.f32.mxu1 %vm133_vm1, %v329_v14 }
 0x14a   :  { %1656 = vmatprep.subr.msk.mxu1 %vm133_vm1, %v333_v15 }
 0x14d   :  { %1657 = vmatpush3.xpose.msk.msra.mxu1 %vm133_vm1, %v333_v15 }
 0x150   :  { %1659 = vmatmul.mubr.msk.f32.vlgmr.msra.gmra.mxu1 %vm133_vm1, %v331_v16 }
 0x208   :  { %v1646_v18 = vpop.f32.mrf.mxu1 }
 0x209   :  { %v214_v20 = vadd.f32 %v1646_v18, %v1932_v17 }
 0x20a   :  { %v208_v21 = vpop.f32.mrf.mxu1 }
 0x20b   :  { %v209_v22 = vadd.f32 %v208_v21, %v1937_v19  ;;  %v221_v23 = vsel %vm217_vm2, %v214_v20, -inf }
 0x20c   :  { %222 = vmax.xlane.f32.xlu1 %v221_v23 }
 0x20d   :  { %v218_v24 = vsel %vm217_vm2, %v209_v22, -inf }
 0x20e   :  { %219 = vmax.xlane.f32.xlu0 %v218_v24 }
 0x210   :  { %v1660_v25 = vpop.f32.mrf.mxu1 }
 0x211   :  { %v416_v28 = vadd.f32 %v1660_v25, %v1932_v17 }
 0x212   :  { %v410_v26 = vpop.f32.mrf.mxu1 }
 0x213   :  { %v411_v27 = vadd.f32 %v410_v26, %v1937_v19  ;;  %v422_v30 = vsel %vm217_vm2, %v416_v28, -inf }
 0x215   :  { %v419_v29 = vsel %vm217_vm2, %v411_v27, -inf }
 0x216   :  { %420 = vmax.xlane.f32.xlu0 %v419_v29 }
 0x21a   :  { %423 = vmax.xlane.f32.xlu0 %v422_v30 }
 0x21d   :  { %242 = vrot.lane.b32.xlu1 %v1905_v8, %s1825_s1 }
 0x295   :  { %v223_v31 = vpop.xlane.xlu1 %222 }
 0x296   :  { %v225_v32 = vsub.f32 %v214_v20, %v223_v31 }
 0x297   :  { %v220_v33 = vpop.xlane.xlu0 %219 }
 0x298   :  { %v228_v34 = vmul.f32 1.442695, %v225_v32  ;;  %v224_v35 = vsub.f32 %v209_v22, %v220_v33 }
 0x299   :  { %v243_v36 = vpop.permute.xlu1 %242 }
 0x29a   :  { %1760 = vpow2.f32 %v228_v34  ;;  %v226_v37 = vmul.f32 1.442695, %v224_v35  ;;  %1647 = vmatprep.subr.mxu0 %v243_v36 }
 0x29b   :  { %1648 = vmatpush3.msra.mxu0 %v243_v36 }
 0x29c   :  { %1762 = vpow2.f32 %v226_v37 }
 0x29f   :  { %v421_v38 = vpop.xlane.xlu0 %420 }
 0x2a0   :  { %v425_v48 = vsub.f32 %v411_v27, %v421_v38 }
 0x2a2   :  { %v427_v49 = vmul.f32 1.442695, %v425_v48 }
 0x2a3   :  { %v424_v39 = vpop.xlane.xlu0 %423 }
 0x2a4   :  { %v426_v40 = vsub.f32 %v416_v28, %v424_v39 }
 0x2a6   :  { %v429_v41 = vmul.f32 1.442695, %v426_v40 }
 0x2a7   :  { %v1761_v42 = vpop.eup %1760 }
 0x2a8   :  { %1764 = vpow2.f32 %v429_v41  ;;  %v233_v43 = vsel %vm217_vm2, %v1761_v42, 0.0 }
 0x2a9   :  { %v1763_v44 = vpop.eup %1762  ;;  %234 = vadd.xlane.f32.xlu0 %v233_v43  ;;  %1766 = vpow2.f32 %v427_v49 }
 0x2aa   :  { %v230_v45 = vsel %vm217_vm2, %v1763_v44, 0.0 }
 0x2ab   :  { %231 = vadd.xlane.f32.xlu1 %v230_v45 }
 0x2b5   :  { %v1765_v46 = vpop.eup %1764 }
 0x2b6   :  { %v434_v47 = vsel %vm217_vm2, %v1765_v46, 0.0  ;;  %v1767_v50 = vpop.eup %1766 }
 0x2b7   :  { %435 = vadd.xlane.f32.xlu0 %v434_v47  ;;  %v431_v51 = vsel %vm217_vm2, %v1767_v50, 0.0 }
 0x2bc   :  { %443 = vrot.lane.b32.xlu1 %v1905_v8, %s1826_s20 }
 0x2cd   :  { %240 = vrot.lane.b32.xlu0 %v1907_v10, %s1825_s1 }
 0x2d1   :  { %697 = vrot.lane.b32.xlu0 %v1905_v8, %s1827_s21 }
 0x2d5   :  { %691 = vrot.lane.b32.xlu0 %v1907_v10, %s1828_s22 }
 0x2d9   :  { %981 = vrot.lane.b32.xlu0 %v1905_v8, %s1829_s23 }
 0x2dd   :  { %975 = vrot.lane.b32.xlu0 %v1907_v10, %s1830_s24 }
 0x2e0   :  { %432 = vadd.xlane.f32.xlu1 %v431_v51 }
 0x2f1   :  { %441 = vrot.lane.b32.xlu1 %v1907_v10, %s1826_s20 }
 0x2f5   :  { %695 = vrot.lane.b32.xlu1 %v1907_v10, %s1827_s21 }
 0x2f9   :  { %693 = vrot.lane.b32.xlu1 %v1905_v8, %s1828_s22 }
 0x2fd   :  { %979 = vrot.lane.b32.xlu1 %v1907_v10, %s1829_s23 }
 0x301   :  { %977 = vrot.lane.b32.xlu1 %v1905_v8, %s1830_s24 }
 0x332   :  { %v235_v52 = vpop.xlane.xlu0 %234 }
 0x333   :  { %1768 = vrcp.f32 %v235_v52 }
 0x334   :  { %v232_v53 = vpop.xlane.xlu1 %231 }
 0x335   :  { %1770 = vrcp.f32 %v232_v53 }
 0x338   :  { %v444_v60 = vpop.permute.xlu1 %443 }
 0x340   :  { %v436_v54 = vpop.xlane.xlu0 %435  ;;  %v1769_v55 = vpop.eup %1768 }
 0x341   :  { %v239_v59 = vmul.f32 %v1769_v55, %v1761_v42  ;;  %1772 = vrcp.f32 %v436_v54 }
 0x342   :  { %v1771_v56 = vpop.eup %1770 }
 0x343   :  { %v238_v57 = vmul.f32 %v1771_v56, %v1763_v44 }
 0x344   :  { %v241_v58 = vpop.permute.xlu0 %240 }
 0x345   :  { %1649 = vmatprep.subr.mxu0 %v241_v58  ;;  %1651 = vmatprep.mubr.msk.f32.mxu0 %vm217_vm2, %v238_v57 }
 0x346   :  { %1650 = vmatpush3.msra.mxu0 %v241_v58 }
 0x347   :  { %1652 = vmatmul.mubr.msk.f32.vlgmr.msra.gmra.mxu0 %vm217_vm2, %v239_v59  ;;  %1661 = vmatprep.subr.mxu0 %v444_v60  ;;  %v891_v59 = vld [vmem:[%s2094_s3 + $0x10] sm:$0xff] }
 0x348   :  { %1662 = vmatpush3.msra.mxu0 %v444_v60  ;;  %v698_v9 = vpop.permute.xlu0 %697 }
 0x34c   :  { %v692_v14 = vpop.permute.xlu0 %691 }
 0x34e   :  { %v1773_v63 = vpop.eup %1772 }
 0x34f   :  { %v440_v3 = vmul.f32 %v1773_v63, %v1765_v46 }
 0x350   :  { %v982_v16 = vpop.permute.xlu0 %981 }
 0x354   :  { %v976_v20 = vpop.permute.xlu0 %975 }
 0x369   :  { %v433_v61 = vpop.xlane.xlu1 %432 }
 0x36a   :  { %1774 = vrcp.f32 %v433_v61 }
 0x36d   :  { %v442_v62 = vpop.permute.xlu1 %441 }
 0x36e   :  { %1663 = vmatprep.subr.mxu0 %v442_v62 }
 0x36f   :  { %1664 = vmatpush3.msra.mxu0 %v442_v62 }
 0x370   :  { %1668 = vmatprep.subr.mxu0 %v528_v4 }
 0x371   :  { %v696_v15 = vpop.permute.xlu1 %695 }
 0x375   :  { %v694_v18 = vpop.permute.xlu1 %693 }
 0x377   :  { %v1775_v0 = vpop.eup %1774 }
 0x378   :  { %v439_v1 = vmul.f32 %v1775_v0, %v1767_v50 }
 0x379   :  { %v980_v21 = vpop.permute.xlu1 %979 }
 0x37a   :  { %1665 = vmatprep.mubr.msk.f32.mxu0 %vm217_vm2, %v439_v1 }
 0x37b   :  { %1666 = vmatmul.mubr.msk.f32.vlgmr.msra.gmra.mxu0 %vm217_vm2, %v440_v3 }
 0x37c   :  { %1669 = vmatpush3.msra.mxu0 %v528_v4 }
 0x37d   :  { %1673 = vmatprep.subr.mxu0 %v327_v6  ;;  %v978_v22 = vpop.permute.xlu1 %977 }
 0x407   :  { %v1653_v7 = vpop.f32.mrf.mxu0 }
 0x409   :  { %v318_v11 = vpop.f32.mrf.mxu0 }
 0x43b   :  { %v1667_v12 = vpop.f32.mrf.mxu0 }
 0x43d   :  { %v519_v13 = vpop.f32.mrf.mxu0 }
 0x43e   :  { %1670 = vmatprep.mubr.msk.f32.mxu0 %vm133_vm1, %v519_v13 }
 0x43f   :  { %1671 = vmatmul.mubr.msk.f32.vlgmr.msra.gmra.mxu0 %vm133_vm1, %v1667_v12 }
 0x440   :  { %1674 = vmatpush3.msra.mxu0 %v327_v6  ;;  %1675 = vmatprep.mubr.msk.f32.mxu0 %vm133_vm1, %v318_v11 }
 0x441   :  { %1678 = vmatprep.subr.msk.mxu0 %vm133_vm1, %v698_v9 }
 0x443   :  { %1676 = vmatmul.mubr.msk.f32.vlgmr.msra.gmra.mxu0 %vm133_vm1, %v1653_v7 }
 0x444   :  { %1679 = vmatpush3.xpose.msk.msra.mxu0 %vm133_vm1, %v698_v9  ;;  %1682 = vmatprep.mubr.msk.f32.mxu0 %vm133_vm1, %v692_v14 }
 0x445   :  { %1680 = vmatprep.subr.msk.mxu0 %vm133_vm1, %v696_v15 }
 0x448   :  { %1681 = vmatpush3.xpose.msk.msra.mxu0 %vm133_vm1, %v696_v15 }
 0x449   :  { %1697 = vmatprep.subr.msk.mxu0 %vm133_vm1, %v982_v16 }
 0x44b   :  { %1683 = vmatmul.mubr.msk.f32.vlgmr.msra.gmra.mxu0 %vm133_vm1, %v694_v18 }
 0x44c   :  { %1698 = vmatpush3.xpose.msk.msra.mxu0 %vm133_vm1, %v982_v16  ;;  %1701 = vmatprep.mubr.msk.f32.mxu0 %vm133_vm1, %v976_v20 }
 0x44d   :  { %1699 = vmatprep.subr.msk.mxu0 %vm133_vm1, %v980_v21 }
 0x450   :  { %1700 = vmatpush3.xpose.msk.msra.mxu0 %vm133_vm1, %v980_v21 }
 0x453   :  { %1702 = vmatmul.mubr.msk.f32.vlgmr.msra.gmra.mxu0 %vm133_vm1, %v978_v22 }
 0x4ff   :  { %v1672_v23 = vpop.f32.mrf.mxu0 }
 0x501   :  { %v601_v24 = vpop.f32.mrf.mxu0 }
 0x503   :  { %v1677_v25 = vpop.f32.mrf.mxu0 }
 0x504   :  { %v1991_v26 = vadd.f32 %v1677_v25, %v1672_v23  ;;  %v1554_v25 = vld [vmem:[%s2097_s6 + $0x1] ss:$0 sm:$0xff] }
 0x505   :  { %v682_v27 = vpop.f32.mrf.mxu0 }
 0x506   :  { %v1993_v28 = vadd.f32 %v682_v27, %v601_v24 }
 0x50b   :  { %v1684_v29 = vpop.f32.mrf.mxu0 }
 0x50c   :  { %v779_v30 = vadd.f32 %v1684_v29, %v1932_v17 }
 0x50d   :  { %v773_v31 = vpop.f32.mrf.mxu0 }
 0x50e   :  { %v774_v32 = vadd.f32 %v773_v31, %v1937_v19  ;;  %v785_v33 = vsel %vm217_vm2, %v779_v30, -inf }
 0x50f   :  { %786 = vmax.xlane.f32.xlu1 %v785_v33 }
 0x510   :  { %v782_v34 = vsel %vm217_vm2, %v774_v32, -inf }
 0x511   :  { %783 = vmax.xlane.f32.xlu0 %v782_v34 }
 0x513   :  { %v1703_v35 = vpop.f32.mrf.mxu0 }
 0x514   :  { %v1063_v53 = vadd.f32 %v1703_v35, %v1932_v17 }
 0x515   :  { %v1057_v36 = vpop.f32.mrf.mxu0 }
 0x516   :  { %v1058_v37 = vadd.f32 %v1057_v36, %v1937_v19  ;;  %v1069_v55 = vsel %vm217_vm2, %v1063_v53, -inf }
 0x518   :  { %v1066_v38 = vsel %vm217_vm2, %v1058_v37, -inf }
 0x520   :  { %806 = vrot.lane.b32.xlu1 %v1905_v8, %s1831_s29 }
 0x544   :  { %1067 = vmax.xlane.f32.xlu1 %v1066_v38 }
 0x598   :  { %v787_v39 = vpop.xlane.xlu1 %786 }
 0x599   :  { %v789_v40 = vsub.f32 %v779_v30, %v787_v39 }
 0x59a   :  { %v784_v41 = vpop.xlane.xlu0 %783 }
 0x59b   :  { %v792_v42 = vmul.f32 1.442695, %v789_v40  ;;  %v788_v43 = vsub.f32 %v774_v32, %v784_v41 }
 0x59c   :  { %v807_v44 = vpop.permute.xlu1 %806 }
 0x59d   :  { %1776 = vpow2.f32 %v792_v42  ;;  %v790_v45 = vmul.f32 1.442695, %v788_v43  ;;  %1685 = vmatprep.subr.mxu1 %v807_v44 }
 0x59e   :  { %1686 = vmatpush3.msra.mxu1 %v807_v44 }
 0x59f   :  { %1778 = vpow2.f32 %v790_v45  ;;  %v1308_v45 = vld [vmem:[%s2095_s4 + $0x10] sm:$0xff] }
 0x5aa   :  { %v1777_v46 = vpop.eup %1776 }
 0x5ab   :  { %v797_v47 = vsel %vm217_vm2, %v1777_v46, 0.0 }
 0x5ac   :  { %v1779_v48 = vpop.eup %1778  ;;  %798 = vadd.xlane.f32.xlu0 %v797_v47  ;;  %v1306_v47 = vld [vmem:[%s2095_s4] sm:$0xff] }
 0x5ad   :  { %v794_v19 = vsel %vm217_vm2, %v1779_v48, 0.0 }
 0x5b0   :  { %795 = vadd.xlane.f32.xlu0 %v794_v19 }
 0x5c6   :  { %804 = vrot.lane.b32.xlu0 %v1907_v10, %s1831_s29 }
 0x5cd   :  { %v1068_v49 = vpop.xlane.xlu1 %1067 }
 0x5ce   :  { %v1072_v50 = vsub.f32 %v1058_v37, %v1068_v49 }
 0x5d0   :  { %v1074_v51 = vmul.f32 1.442695, %v1072_v50 }
 0x5d2   :  { %1780 = vpow2.f32 %v1074_v51 }
 0x5df   :  { %v1781_v52 = vpop.eup %1780 }
 0x5e0   :  { %v1078_v54 = vsel %vm217_vm2, %v1781_v52, 0.0 }
 0x5e1   :  { %1079 = vadd.xlane.f32.xlu1 %v1078_v54  ;;  %v1555_v54 = vld [vmem:[%s2097_s6 + $0x2] ss:$0 sm:$0xff] }
 0x5e5   :  { %1070 = vmax.xlane.f32.xlu0 %v1069_v55 }
 0x5f2   :  { %1090 = vrot.lane.b32.xlu1 %v1905_v8, %s1832_s30 }
 0x635   :  { %v799_v56 = vpop.xlane.xlu0 %798 }
 0x636   :  { %1782 = vrcp.f32 %v799_v56 }
 0x639   :  { %v796_v57 = vpop.xlane.xlu0 %795 }
 0x63a   :  { %1784 = vrcp.f32 %v796_v57 }
 0x63d   :  { %v805_v58 = vpop.permute.xlu0 %804 }
 0x63e   :  { %1687 = vmatprep.subr.mxu1 %v805_v58 }
 0x63f   :  { %1688 = vmatpush3.msra.mxu1 %v805_v58 }
 0x640   :  { %1692 = vmatprep.subr.mxu1 %v891_v59 }
 0x643   :  { %v1783_v17 = vpop.eup %1782 }
 0x644   :  { %v803_v62 = vmul.f32 %v1783_v17, %v1777_v46  ;;  %v1307_v46 = vld [vmem:[%s2095_s4 + $0x8] sm:$0xff] }
 0x647   :  { %v1785_v60 = vpop.eup %1784 }
 0x648   :  { %v802_v61 = vmul.f32 %v1785_v60, %v1779_v48 }
 0x64a   :  { %1689 = vmatprep.mubr.msk.f32.mxu1 %vm217_vm2, %v802_v61 }
 0x64b   :  { %1690 = vmatmul.mubr.msk.f32.vlgmr.msra.gmra.mxu1 %vm217_vm2, %v803_v62  ;;  %v1412_v62 = vld [vmem:[%s2096_s5 + $0x38] sm:$0xff] }
 0x64c   :  { %1693 = vmatpush3.msra.mxu1 %v891_v59  ;;  %v1556_v59 = vld [vmem:[%s2097_s6 + $0x3] ss:$0 sm:$0xff] }
 0x66a   :  { %v1080_v8 = vpop.xlane.xlu1 %1079 }
 0x66e   :  { %v1091_v63 = vpop.permute.xlu1 %1090  ;;  %v1071_v0 = vpop.xlane.xlu0 %1070 }
 0x66f   :  { %v1073_v1 = vsub.f32 %v1063_v53, %v1071_v0  ;;  %1704 = vmatprep.subr.mxu1 %v1091_v63  ;;  %v1409_v0 = vld [vmem:[%s2096_s5 + $0x20] sm:$0xff] }
 0x671   :  { %v1076_v3 = vmul.f32 1.442695, %v1073_v1  ;;  %v1408_v1 = vld [vmem:[%s2096_s5 + $0x18] sm:$0xff] }
 0x673   :  { %1786 = vpow2.f32 %v1076_v3  ;;  %v1407_v3 = vld [vmem:[%s2096_s5 + $0x10] sm:$0xff] }
 0x674   :  { %1788 = vrcp.f32 %v1080_v8  ;;  %v1411_v8 = vld [vmem:[%s2096_s5 + $0x30] sm:$0xff] }
 0x680   :  { %v1787_v4 = vpop.eup %1786 }
 0x681   :  { %v1081_v6 = vsel %vm217_vm2, %v1787_v4, 0.0  ;;  %v1789_v7 = vpop.eup %1788 }
 0x682   :  { %1082 = vadd.xlane.f32.xlu0 %v1081_v6  ;;  %v1086_v13 = vmul.f32 %v1789_v7, %v1781_v52  ;;  %v1405_v6 = vld [vmem:[%s2096_s5] sm:$0xff] }
 0x683   :  { %v1557_v7 = vld [vmem:[%s2097_s6 + $0x4] ss:$0 sm:$0xff] }
 0x698   :  { %1088 = vrot.lane.b32.xlu0 %v1907_v10, %s1832_s30  ;;  %v1175_v10 = vld [vmem:[%s2094_s3 + $0x18] sm:$0xff] }
 0x70b   :  { %v1691_v9 = vpop.f32.mrf.mxu1  ;;  %v1083_v11 = vpop.xlane.xlu0 %1082 }
 0x70c   :  { %1790 = vrcp.f32 %v1083_v11 }
 0x70d   :  { %v882_v12 = vpop.f32.mrf.mxu1 }
 0x70e   :  { %1694 = vmatprep.mubr.msk.f32.mxu1 %vm133_vm1, %v882_v12 }
 0x70f   :  { %1695 = vmatmul.mubr.msk.f32.vlgmr.msra.gmra.mxu1 %vm133_vm1, %v1691_v9  ;;  %v1089_v14 = vpop.permute.xlu0 %1088 }
 0x710   :  { %1705 = vmatpush3.msra.mxu1 %v1091_v63  ;;  %1708 = vmatprep.mubr.msk.f32.mxu1 %vm217_vm2, %v1086_v13  ;;  %v1410_v63 = vld [vmem:[%s2096_s5 + $0x28] sm:$0xff] }
 0x711   :  { %1706 = vmatprep.subr.mxu1 %v1089_v14 }
 0x712   :  { %1707 = vmatpush3.msra.mxu1 %v1089_v14 }
 0x713   :  { %1711 = vmatprep.subr.mxu1 %v1175_v10 }
 0x719   :  { %v1791_v15 = vpop.eup %1790 }
 0x71a   :  { %v1087_v16 = vmul.f32 %v1791_v15, %v1787_v4  ;;  %v1406_v4 = vld [vmem:[%s2096_s5 + $0x8] sm:$0xff] }
 0x71c   :  { %1709 = vmatmul.mubr.msk.f32.vlgmr.msra.gmra.mxu1 %vm217_vm2, %v1087_v16 }
 0x71d   :  { %1712 = vmatpush3.msra.mxu1 %v1175_v10 }
 0x71e   :  { %1727 = vmatprep.subr.mxu1 %v1412_v62 }
 0x7cf   :  { %v1696_v18 = vpop.f32.mrf.mxu1 }
 0x7d0   :  { %v974_v20 = vadd.f32 %v1696_v18, %v1991_v26 }
 0x7d1   :  { %v964_v21 = vpop.f32.mrf.mxu1 }
 0x7d2   :  { %v973_v22 = vadd.f32 %v964_v21, %v1993_v28 }
 0x7dc   :  { %v1710_v23 = vpop.f32.mrf.mxu1 }
 0x7de   :  { %v1166_v24 = vpop.f32.mrf.mxu1 }
 0x7df   :  { %1713 = vmatprep.mubr.msk.f32.mxu1 %vm133_vm1, %v1166_v24 }
 0x7e0   :  { %1714 = vmatmul.mubr.msk.f32.vlgmr.msra.gmra.mxu1 %vm133_vm1, %v1710_v23 }
 0x7e1   :  { %1728 = vmatpush3.msra.mxu1 %v1412_v62 }
 0x7e2   :  { %1729 = vmatprep.subr.mxu1 %v1411_v8 }
 0x7e3   :  { %1730 = vmatpush3.msra.mxu1 %v1411_v8 }
 0x7e4   :  { %1731 = vmatprep.subr.mxu1 %v1410_v63 }
 0x7e5   :  { %1732 = vmatpush3.msra.mxu1 %v1410_v63 }
 0x7e6   :  { %1733 = vmatprep.subr.mxu1 %v1409_v0 }
 0x7e7   :  { %1734 = vmatpush3.msra.mxu1 %v1409_v0 }
 0x7e8   :  { %1735 = vmatprep.subr.mxu1 %v1408_v1 }
 0x7e9   :  { %1736 = vmatpush3.msra.mxu1 %v1408_v1 }
 0x7ea   :  { %1737 = vmatprep.subr.mxu1 %v1407_v3 }
 0x7eb   :  { %1738 = vmatpush3.msra.mxu1 %v1407_v3 }
 0x7ec   :  { %1739 = vmatprep.subr.mxu1 %v1406_v4 }
 0x7ed   :  { %1740 = vmatpush3.msra.mxu1 %v1406_v4 }
 0x7ee   :  { %1741 = vmatprep.subr.mxu1 %v1405_v6 }
 0x7ef   :  { %1742 = vmatpush3.msra.mxu1 %v1405_v6 }
 0x8a0   :  { %v1715_v27 = vpop.f32.mrf.mxu1 }
 0x8a1   :  { %v1258_v29 = vadd.f32 %v1715_v27, %v974_v20 }
 0x8a2   :  { %v1248_v30 = vpop.f32.mrf.mxu1 }
 0x8a3   :  { %v1264_v31 = vadd.f32 %v1554_v25, %v1258_v29  ;;  %v1257_v32 = vadd.f32 %v1248_v30, %v973_v22 }
 0x8a5   :  { %v1263_v33 = vadd.f32 %v1554_v25, %v1257_v32  ;;  %v1266_v26 = vadd.f32 %v1264_v31, %v1898_v5  ;;  %v1560_v25 = vld [vmem:[%s2097_s6 + $0x5] ss:$0 sm:$0xff] }
 0x8a7   :  { %v1270_v28 = vsel %vm45_vm0, %v1266_v26, 0.0  ;;  %v1265_v34 = vadd.f32 %v1263_v33, %v1885_v2  ;;  %v1309_v2 = vld [vmem:[%s2095_s4 + $0x18] sm:$0xff] }
 0x8a8   :  { %1271 = vadd.xlane.f32.xlu0 %v1270_v28  ;;  %1716 = vmatprep.subr.mxu0 %v1309_v2 }
 0x8a9   :  { %v1267_v35 = vsel %vm45_vm0, %v1265_v34, 0.0  ;;  %1717 = vmatpush3.msra.mxu0 %v1309_v2 }
 0x8aa   :  { %1268 = vadd.xlane.f32.xlu1 %v1267_v35  ;;  %1718 = vmatprep.subr.mxu0 %v1308_v45 }
 0x8ab   :  { %1719 = vmatpush3.msra.mxu0 %v1308_v45 }
 0x8ac   :  { %1720 = vmatprep.subr.mxu0 %v1307_v46 }
 0x8ad   :  { %1721 = vmatpush3.msra.mxu0 %v1307_v46 }
 0x8ae   :  { %1722 = vmatprep.subr.mxu0 %v1306_v47 }
 0x8af   :  { %1723 = vmatpush3.msra.mxu0 %v1306_v47 }
 0x931   :  { %v1272_v36 = vpop.xlane.xlu0 %1271 }
 0x932   :  { %v1275_v37 = vmul.f32 0.03125, %v1272_v36 }
 0x933   :  { %v1269_v38 = vpop.xlane.xlu1 %1268 }
 0x934   :  { %v1277_v39 = vsub.f32 %v1266_v26, %v1275_v37  ;;  %v1274_v40 = vmul.f32 0.03125, %v1269_v38 }
 0x936   :  { %v1276_v41 = vsub.f32 %v1265_v34, %v1274_v40  ;;  %v1279_v42 = vmul.f32 %v1277_v39, %v1277_v39 }
 0x938   :  { %v1283_v43 = vsel %vm45_vm0, %v1279_v42, 0.0  ;;  %v1278_v44 = vmul.f32 %v1276_v41, %v1276_v41 }
 0x939   :  { %1284 = vadd.xlane.f32.xlu0 %v1283_v43 }
 0x93a   :  { %v1280_v5 = vsel %vm45_vm0, %v1278_v44, 0.0 }
 0x93b   :  { %1281 = vadd.xlane.f32.xlu1 %v1280_v5 }
 0x9c2   :  { %v1285_v48 = vpop.xlane.xlu0 %1284 }
 0x9c3   :  { %v1287_v19 = vmul.f32 0.03125, %v1285_v48 }
 0x9c4   :  { %v1282_v49 = vpop.xlane.xlu1 %1281 }
 0x9c5   :  { %v1289_v50 = vadd.f32 1e-05, %v1287_v19  ;;  %v1286_v51 = vmul.f32 0.03125, %v1282_v49 }
 0x9c7   :  { %1792 = vrsqrt.f32 %v1289_v50  ;;  %v1288_v52 = vadd.f32 1e-05, %v1286_v51 }
 0x9c9   :  { %1794 = vrsqrt.f32 %v1288_v52 }
 0x9d4   :  { %v1793_v53 = vpop.eup %1792 }
 0x9d5   :  { %v1293_v55 = vmul.f32 %v1793_v53, %v1277_v39 }
 0x9d6   :  { %v1795_v56 = vpop.eup %1794 }
 0x9d7   :  { %v1292_v57 = vmul.f32 %v1795_v56, %v1276_v41  ;;  %v1299_v58 = vmul.f32 %v1555_v54, %v1293_v55 }
 0x9d9   :  { %v1298_v17 = vmul.f32 %v1555_v54, %v1292_v57  ;;  %v1305_v61 = vadd.f32 %v1556_v59, %v1299_v58 }
 0x9db   :  { %v1304_v60 = vadd.f32 %v1556_v59, %v1298_v17 }
 0x9dd   :  { %1724 = vmatprep.mubr.msk.f32.mxu0 %vm45_vm0, %v1304_v60 }
 0x9de   :  { %1725 = vmatmul.mubr.msk.f32.vlgmr.msra.gmra.mxu0 %vm45_vm0, %v1305_v61 }
 0xa9e   :  { %v1726_v9 = vpop.f32.mrf.mxu0 }
 0xa9f   :  { %v1392_v11 = vadd.f32 %v1726_v9, %v1557_v7 }
 0xaa0   :  { %v1386_v12 = vpop.f32.mrf.mxu0 }
 0xaa1   :  { %v1398_v13 = vmul.f32 0.70710677, %v1392_v11  ;;  %v1387_v14 = vadd.f32 %v1557_v7, %v1386_v12  ;;  %v1396_v22 = vmul.f32 0.5, %v1392_v11 }
 0xaa3   :  { %1796 = verf.f32 %v1398_v13  ;;  %v1397_v15 = vmul.f32 0.70710677, %v1387_v14  ;;  %v1395_v20 = vmul.f32 0.5, %v1387_v14 }
 0xaa5   :  { %1798 = verf.f32 %v1397_v15 }
 0xab0   :  { %v1797_v16 = vpop.eup %1796 }
 0xab1   :  { %v1402_v18 = vadd.f32 1.0, %v1797_v16 }
 0xab2   :  { %v1799_v10 = vpop.eup %1798 }
 0xab3   :  { %v1401_v21 = vadd.f32 1.0, %v1799_v10  ;;  %v1404_v24 = vmul.f32 %v1402_v18, %v1396_v22 }
 0xab5   :  { %v1403_v23 = vmul.f32 %v1401_v21, %v1395_v20 }
 0xab7   :  { %1743 = vmatprep.mubr.msk.f32.mxu1 %vm1417_vm3, %v1403_v23 }
 0xab8   :  { %1744 = vmatmul.mubr.msk.f32.vlgmr.msra.gmra.mxu1 %vm1417_vm3, %v1404_v24 }
 0xb78   :  { %v1745_v27 = vpop.f32.mrf.mxu1 }
 0xb79   :  { %v1496_v29 = vadd.f32 %v1745_v27, %v1560_v25 }
 0xb7a   :  { %v1490_v30 = vpop.f32.mrf.mxu1 }
 0xb7b   :  { %v1500_v31 = vadd.f32 %v1496_v29, %v1305_v61  ;;  %v1491_v32 = vadd.f32 %v1560_v25, %v1490_v30 }
 0xb7d   :  { %1502 = vst.msk [vmem:[#allocation2 + $0x8] sm:$0xff] %vm45_vm0, %v1500_v31  ;;  %v1499_v33 = vadd.f32 %v1491_v32, %v1304_v60 }
 0xb7f   :  { %1501 = vst.msk [vmem:[#allocation2] sm:$0xff] %vm45_vm0, %v1499_v33 }
 0xb80   :  { %1811 = shalt.err (!%p1808_p4)
}
 0xb81   :  { %s1834_s6 = smov 128   ;;  %s1835_s17 = smov 8  }
 0xb82   :  { %1514 = dma.vmem_to_hbm [thread:$0]  %s1509_s15, 256, %s2098_s7, [#allocation3], %s1834_s6, %s1834_s6, %s1835_s17  }
 0xb83   :  { %1820 = dma.done.wait [#allocation3], 256  }
 0xb84   :  { %1821 = vsyncadd [#allocation3], 4294967040 }
 0xb85   :  { %1518 = vsyncpa [#allocation3], 1 }

</bundles_post_ra>
